<compile_context>
chip_gen: v7x
topology: tpu7x:2x2x1
jax: 0.10.0
libtpu: 0.0.40
codegen_flags: <defaults>
</compile_context>

<pallas_src>
import math
import functools

import jax
import jax.numpy as jnp
from jax.experimental import pallas as pl
from jax.experimental.pallas import tpu as pltpu


def _round_up(n: int, m: int) -> int:
    return ((n + m - 1) // m) * m


def _embed_gather_kernel(ids_ref, emb_ref, out_ref, buf_ref, sem_ref, *,
                         token_tile, scale):
    # ids_ref : SMEM (N_pad,) int32     -- all token ids (scalar prefetch)
    # emb_ref : HBM  (vocab, d_model)   -- full embedding table, never in VMEM
    # out_ref : VMEM (token_tile, d_model) output tile
    # buf_ref : VMEM (token_tile, d_model) gather landing buffer
    # sem_ref : DMA semaphores, one per gathered row
    i = pl.program_id(0)
    base = i * token_tile

    # Issue all row gathers for this tile up front so the DMAs run concurrently.
    @pl.loop(0, token_tile)
    def _issue(t):
        row = ids_ref[base + t]
        pltpu.make_async_copy(
            emb_ref.at[pl.ds(row, 1)],      # (1, d_model) row in HBM
            buf_ref.at[pl.ds(t, 1)],        # (1, d_model) row in VMEM
            sem_ref.at[t],
        ).start()

    # Wait for every row of this tile (dummy src index: wait only needs
    # matching shape + the semaphore).
    @pl.loop(0, token_tile)
    def _wait(t):
        pltpu.make_async_copy(
            emb_ref.at[pl.ds(0, 1)],
            buf_ref.at[pl.ds(t, 1)],
            sem_ref.at[t],
        ).wait()

    # Fused sqrt(d_model) scale (rides a free VPU slot under the DMA bound).
    out_ref[...] = (buf_ref[...] * scale).astype(out_ref.dtype)


def input_embedding(x, emb_table, *, token_tile=128):
    """x: int [B, S] token ids; emb_table: f32 [vocab, d_model] -> [B, S, d_model]."""
    B, S = x.shape
    vocab_size, d_model = emb_table.shape
    N = B * S
    scale = math.sqrt(d_model)

    # Tile sizing: at least 8 (sublane constraint), no larger than the padded
    # token count so tiny inputs don't over-fetch.
    token_tile = max(8, min(_round_up(token_tile, 8), _round_up(N, 8)))
    n_pad = _round_up(N, token_tile)
    num_tiles = n_pad // token_tile

    # Clamp ids so an out-of-range token can never drive an OOB HBM DMA
    # (torch.nn.Embedding would error; we clamp to the last valid row).
    ids = jnp.clip(x.reshape(-1).astype(jnp.int32), 0, vocab_size - 1)
    if n_pad != N:
        ids = jnp.pad(ids, (0, n_pad - N))

    kernel = functools.partial(_embed_gather_kernel,
                               token_tile=token_tile, scale=scale)

    out_flat = pl.pallas_call(
        kernel,
        out_shape=jax.ShapeDtypeStruct((n_pad, d_model), emb_table.dtype),
        grid_spec=pltpu.PrefetchScalarGridSpec(
            num_scalar_prefetch=1,                     # ids -> SMEM
            grid=(num_tiles,),
            in_specs=[
                pl.BlockSpec(memory_space=pl.ANY),     # table stays in HBM
            ],
            out_specs=pl.BlockSpec((token_tile, d_model),
                                   lambda i, ids_ref: (i, 0)),
            scratch_shapes=[
                pltpu.VMEM((token_tile, d_model), emb_table.dtype),
                pltpu.SemaphoreType.DMA((token_tile,)),
            ],
        ),
        compiler_params=pltpu.CompilerParams(
            dimension_semantics=("parallel",)),
    )(ids, emb_table)

    return out_flat[:N].reshape(B, S, d_model)


if __name__ == "__main__":
    # Small shapes consistent with the module's forward: x -> [B, S] token ids.
    B, S = 2, 8
    d_model = 128
    vocab_size = 512

    key = jax.random.PRNGKey(0)
    k_ids, k_emb = jax.random.split(key)

    x = jax.random.randint(k_ids, (B, S), 0, vocab_size, dtype=jnp.int32)
    # nn.Embedding default init: weights ~ N(0, 1)
    emb_table = jax.random.normal(k_emb, (vocab_size, d_model), dtype=jnp.float32)

    out = input_embedding(x, emb_table)
    out = jax.block_until_ready(out)

    # Reference check (plain JAX gather + scale), same semantics as PyTorch.
    ref = jnp.take(emb_table, x, axis=0) * math.sqrt(d_model)
    assert out.shape == (B, S, d_model)
    assert jnp.allclose(out, ref, atol=1e-5, rtol=1e-5)

    print("KERNEL_OK")
</pallas_src>

<mosaic_0001>
module attributes {stable_mosaic.version = 11 : i64} {
  func.func @_embed_gather_kernel(%arg0: i32, %arg1: memref<16xi32, #tpu.memory_space<smem>>, %arg2: memref<512x128xf32, #tpu.memory_space<any>>, %arg3: memref<16x128xf32, #tpu.memory_space<vmem>>, %arg4: memref<16x128xf32, #tpu.memory_space<vmem>>, %arg5: memref<16x!tpu.dma_semaphore, #tpu.memory_space<semaphore_mem>>) attributes {dimension_semantics = [#tpu.dimension_semantics<parallel>], iteration_bounds = array<i64: 1>, scalar_prefetch = 1 : i64, scratch_operands = 2 : i64, tpu.core_type = #tpu.core_type<tc>, window_params = [{}, {transform_indices = @transform_1, window_bounds = array<i64: 16, 128>}]} {
    %c16_i32 = arith.constant 16 : i32
    %0 = arith.muli %arg0, %c16_i32 : i32
    %c0_i32 = arith.constant 0 : i32
    %c16_i32_0 = arith.constant 16 : i32
    %1 = arith.addi %c0_i32, %c16_i32_0 : i32
    %c1_i32 = arith.constant 1 : i32
    scf.for %arg6 = %c0_i32 to %1 step %c1_i32  : i32 {
      %c1_i32_9 = arith.constant 1 : i32
      %7 = arith.muli %arg6, %c1_i32_9 : i32
      %c0_i32_10 = arith.constant 0 : i32
      %8 = arith.addi %c0_i32_10, %7 : i32
      %9 = arith.addi %0, %8 : i32
      %10 = arith.index_cast %9 : i32 to index
      %11 = memref.load %arg1[%10] : memref<16xi32, #tpu.memory_space<smem>>
      %c0_i32_11 = arith.constant 0 : i32
      %12 = tpu.memref_slice %arg2[%11, %c0_i32_11] : memref<512x128xf32, #tpu.memory_space<any>> -> memref<1x128xf32, #tpu.memory_space<any>>
      %c0_i32_12 = arith.constant 0 : i32
      %13 = tpu.memref_slice %arg4[%8, %c0_i32_12] : memref<16x128xf32, #tpu.memory_space<vmem>> -> memref<1x128xf32, #tpu.memory_space<vmem>>
      %14 = tpu.memref_slice %arg5[%8] : memref<16x!tpu.dma_semaphore, #tpu.memory_space<semaphore_mem>> -> memref<1x!tpu.dma_semaphore, #tpu.memory_space<semaphore_mem>>
      %15 = tpu.memref_squeeze %14 : memref<1x!tpu.dma_semaphore, #tpu.memory_space<semaphore_mem>> -> memref<!tpu.dma_semaphore, #tpu.memory_space<semaphore_mem>>
      tpu.enqueue_dma source(%12 : memref<1x128xf32, #tpu.memory_space<any>>) target(%13 : memref<1x128xf32, #tpu.memory_space<vmem>>) target_semaphore(%15 : memref<!tpu.dma_semaphore, #tpu.memory_space<semaphore_mem>>)
    }
    %c16_i32_1 = arith.constant 16 : i32
    %c0_i32_2 = arith.constant 0 : i32
    %c16_i32_3 = arith.constant 16 : i32
    %2 = arith.addi %c0_i32_2, %c16_i32_3 : i32
    %c1_i32_4 = arith.constant 1 : i32
    scf.for %arg6 = %c0_i32_2 to %2 step %c1_i32_4  : i32 {
      %c1_i32_9 = arith.constant 1 : i32
      %7 = arith.muli %arg6, %c1_i32_9 : i32
      %c0_i32_10 = arith.constant 0 : i32
      %8 = arith.addi %c0_i32_10, %7 : i32
      %c0_i32_11 = arith.constant 0 : i32
      %c0_i32_12 = arith.constant 0 : i32
      %9 = tpu.memref_slice %arg2[%c0_i32_11, %c0_i32_12] : memref<512x128xf32, #tpu.memory_space<any>> -> memref<1x128xf32, #tpu.memory_space<any>>
      %c0_i32_13 = arith.constant 0 : i32
      %10 = tpu.memref_slice %arg4[%8, %c0_i32_13] : memref<16x128xf32, #tpu.memory_space<vmem>> -> memref<1x128xf32, #tpu.memory_space<vmem>>
      %11 = tpu.memref_slice %arg5[%8] : memref<16x!tpu.dma_semaphore, #tpu.memory_space<semaphore_mem>> -> memref<1x!tpu.dma_semaphore, #tpu.memory_space<semaphore_mem>>
      %12 = tpu.memref_squeeze %11 : memref<1x!tpu.dma_semaphore, #tpu.memory_space<semaphore_mem>> -> memref<!tpu.dma_semaphore, #tpu.memory_space<semaphore_mem>>
      tpu.wait_dma2 semaphore(%12 : memref<!tpu.dma_semaphore, #tpu.memory_space<semaphore_mem>>) src(%9 : memref<1x128xf32, #tpu.memory_space<any>>) dst(%10 : memref<1x128xf32, #tpu.memory_space<vmem>>)
    }
    %c16_i32_5 = arith.constant 16 : i32
    %c0 = arith.constant 0 : index
    %c0_6 = arith.constant 0 : index
    %3 = vector.load %arg4[%c0, %c0_6] : memref<16x128xf32, #tpu.memory_space<vmem>>, vector<16x128xf32>
    %cst = arith.constant 11.3137083 : f32
    %4 = vector.broadcast %cst : f32 to vector<16x128xf32>
    %5 = arith.mulf %3, %4 : vector<16x128xf32>
    %c0_7 = arith.constant 0 : index
    %c0_8 = arith.constant 0 : index
    %6 = vector.load %arg3[%c0_7, %c0_8] : memref<16x128xf32, #tpu.memory_space<vmem>>, vector<16x128xf32>
    tpu.vector_store %arg3[%c0_7, %c0_8], %5 {strides = array<i32>} : memref<16x128xf32, #tpu.memory_space<vmem>>, vector<16x128xf32>,
    return
  }
  func.func @transform_1(%arg0: i32, %arg1: memref<16xi32, #tpu.memory_space<smem>>) -> (i32, i32) {
    %c0_i32 = arith.constant 0 : i32
    %c0_i32_0 = arith.constant 0 : i32
    return %arg0, %c0_i32 : i32, i32
  }
}

</mosaic_0001>

<bundles_post_ra>
// kernel: tpu_custom_call.1
= control target key start
LH: loop header
LB: loop body
LE: loop exit
PB: predicated region body
PF: predicated region fallthrough
CT: control target
= control target key end

     0   :  { %s373_s0 = inlined_call_operand.hbm [shape: s32[16], index: 0, kind: input, shape index: {}]   ;;  %s374_s1 = inlined_call_operand.hbm [shape: f32[512,128], index: 1, kind: input, shape index: {}]   ;;  %s375_s2 = inlined_call_operand.hbm [shape: f32[16,128], index: 2, kind: output, shape index: {}]  }
   0x1   :  { %s231_s11 = scalar_lea.hbm %s373_s0, 16 }
   0x2   :  { %p232_p0 = scmp.ne.s32.totalorder %s373_s0, %s231_s11  ;;  %p235_p1 = scmp.lt.u32.totalorder %s231_s11, %s373_s0 }
   0x4   :  { %p237_p2 = pnand %p235_p1, %p232_p0 }
   0x6   :  { %240 = shalt.err (!%p237_p2)  }
   0x7   :  { %s309_s16 = smov [#allocation5]  }
   0x8   :  { %8 = dma.hbm_to_smem %s373_s0, 16, %s309_s16, [#allocation4] }
   0x9   :  { %295 = dma.done.wait [#allocation4], 16 }
   0xa   :  { %296 = vsyncadd [#allocation4], 4294967280 }
   0xb   :  { %10 = sfence }
   0xc   :  { %11 = vsyncpa [#allocation7], 0  ;;  %s341_s19 = smov 0  }
   0xd LB: > { %s20_s20 = sld [smem:[#allocation5 + %s303_s19]]  ;;  %s23_s21 = scalar_lea.vmem [#allocation2], %s303_s19  ;;  %s303_s19 = sphi %s341_s19, %s18_s19  }
   0xe   : > { %s32_s22 = sshll.u32 %s23_s21, 4  ;;  %s24_s26 = scalar_lea.sflag [#allocation3], %s303_s19  ;;  %s33_s22 = int_to_ptr.vmem [resolvable:$true] %s32_s22 }
   0xf   : > { %s243_s30 = scalar_lea.hbm %s374_s1, 8192 }
  0x13   : > { %s194_s23 = sshll.u32 %s20_s20, 4 }
  0x14   : > { %s22_s25 = scalar_lea.hbm %s374_s1, %s194_s23 }
  0x15   : > { %s241_s27 = scalar_lea.hbm %s22_s25, 16  ;;  %p244_p4 = scmp.lt.u32.totalorder %s22_s25, %s374_s1 }
  0x16   : > { %p242_p3 = scmp.ne.s32.totalorder %s22_s25, %s241_s27  ;;  %p245_p5 = scmp.lt.u32.totalorder %s243_s30, %s241_s27 }
  0x17   : > { %p247_p7 = scmp.lt.u32.totalorder %s241_s27, %s22_s25 }
  0x18   : > { %p246_p6 = por %p245_p5, %p244_p4 }
  0x1a   : > { %p248_p8 = por %p247_p7, %p246_p6 }
  0x1c   : > { %p249_p9 = pnand %p248_p8, %p242_p3 }
  0x1e   : > { %252 = shalt.err (!%p249_p9)  }
  0x1f   : > { %s253_s5 = scalar_lea.vmem %s33_s22, 16  ;;  %s310_s6 = smov [#allocation2]  }
  0x20   : > { %p254_p10 = scmp.ne.s32.totalorder %s33_s22, %s253_s5  ;;  %s255_s7 = sshll.u32 %s310_s6, 4  ;;  %s256_s7 = int_to_ptr.vmem [resolvable:$false] %s255_s7 }
  0x21   : > { %s257_s8 = scalar_lea.vmem %s256_s7, 256  ;;  %p258_p11 = scmp.lt.s32.totalorder %s33_s22, %s256_s7 }
  0x22   : > { %p259_p12 = scmp.lt.s32.totalorder %s257_s8, %s253_s5 }
  0x24   : > { %p260_p13 = por %p259_p12, %p258_p11 }
  0x26   : > { %p261_p0 = pnand %p260_p13, %p254_p10 }
  0x28   : > { %264 = shalt.err (!%p261_p0)  }
  0x29   : > { %35 = dma.hbm_to_vmem [thread:$0]  %s22_s25, 16, %s33_s22, %s24_s26 }
  0x2a   : > { %s18_s19 = sadd.s32 1, %s303_s19  }
  0x2b   : > { %p15_p1 = scmp.ge.s32.totalorder %s18_s19, 16  }
  0x2c   :  { %s305_s9 = smov (%p15_p1), 0  }
  0x2d   :  { %17 = sbr.rel (!%p15_p1) target bundleno = 13 (0xd), region = 57 }
  0x34 LB: > { %s42_s10 = scalar_lea.sflag [#allocation3], %s307_s9  ;;  %s307_s9 = sphi %s305_s9, %s41_s9  }
  0x35   : > { %297 = dma.done.wait %s42_s10, 16 }
  0x36   : > { %298 = vsyncadd %s42_s10, 4294967280  ;;  %s41_s9 = sadd.s32 1, %s307_s9  }
  0x37   : > { %p38_p2 = scmp.ge.s32.totalorder %s41_s9, 16  }
  0x38   :  { %v46_v0 = vld [vmem:[#allocation2] sm:$0xff] (%p38_p2)  ;;  %v47_v1 = vld [vmem:[#allocation2 + $0x8] sm:$0xff] (%p38_p2)  ;;  %s311_s11 = smov (%p38_p2), [#allocation6]  }
  0x39   :  { %40 = sbr.rel (!%p38_p2) target bundleno = 52 (0x34), region = 68  ;;  %v48_v2 = vmul.f32 (%p38_p2), 11.313708, %v46_v0  ;;  %v49_v3 = vmul.f32 (%p38_p2), 11.313708, %v47_v1  ;;  %s57_s12 = sshll.u32 (%p38_p2), %s311_s11, 4  ;;  %s58_s12 = int_to_ptr.vmem [resolvable:$true] %s57_s12 }
  0x3a   :  { %s265_s1 = scalar_lea.vmem (%p38_p2), %s58_s12, 256  ;;  %p270_p4 = scmp.lt.s32.totalorder (%p38_p2), %s58_s12, %s58_s12 }
  0x3b   :  { %50 = vst [vmem:[#allocation6] sm:$0xff] (%p38_p2), %v48_v2  ;;  %51 = vst [vmem:[#allocation6 + $0x8] sm:$0xff] (%p38_p2), %v49_v3  ;;  %p266_p3 = scmp.ne.s32.totalorder (%p38_p2), %s58_s12, %s265_s1  ;;  %p271_p5 = scmp.lt.s32.totalorder (%p38_p2), %s265_s1, %s265_s1 }
  0x3d   :  { %p272_p6 = por (%p38_p2), %p271_p5, %p270_p4 }
  0x3f   :  { %p273_p7 = pnand (%p38_p2), %p272_p6, %p266_p3 }
  0x41   :  { %276 = shalt.err (!%p273_p7)
}
  0x42   :  { %s277_s15 = scalar_lea.hbm %s375_s2, 256 }
  0x43   :  { %p278_p8 = scmp.ne.s32.totalorder %s375_s2, %s277_s15  ;;  %p281_p9 = scmp.lt.u32.totalorder %s277_s15, %s375_s2 }
  0x45   :  { %p283_p10 = pnand %p281_p9, %p278_p8 }
  0x47   :  { %286 = shalt.err (!%p283_p10)
}
  0x48   :  { %s312_s20 = smov 128   ;;  %s313_s21 = smov 8  }
  0x49   :  { %63 = dma.vmem_to_hbm [thread:$0]  %s58_s12, 256, %s375_s2, [#allocation7], %s312_s20, %s312_s20, %s313_s21  }
  0x4a   :  { %299 = dma.done.wait [#allocation7], 256  }
  0x4b   :  { %300 = vsyncadd [#allocation7], 4294967040 }
  0x4c   :  { %67 = vsyncpa [#allocation7], 1 }
  0x4d   :  { %68 = vsyncmov [#allocation3] }
  0x50   :  { %s69_s0 = vpop.sfrf %68 }
  0x51   :  { %p195_p11 = scmp.ne.s32.totalorder %s69_s0, 0 }
  0x53   :  { %73 = shalt.err (%p195_p11)  }
  0x54   :  { %75 = vsyncmov [#allocation3 + $0x1] }
  0x57   :  { %s76_s24 = vpop.sfrf %75 }
  0x58   :  { %p196_p12 = scmp.ne.s32.totalorder %s76_s24, 0 }
  0x5a   :  { %80 = shalt.err (%p196_p12)  }
  0x5b   :  { %82 = vsyncmov [#allocation3 + $0x2] }
  0x5e   :  { %s83_s25 = vpop.sfrf %82 }
  0x5f   :  { %p197_p13 = scmp.ne.s32.totalorder %s83_s25, 0 }
  0x61   :  { %87 = shalt.err (%p197_p13)  }
  0x62   :  { %89 = vsyncmov [#allocation3 + $0x3] }
  0x65   :  { %s90_s26 = vpop.sfrf %89 }
  0x66   :  { %p198_p0 = scmp.ne.s32.totalorder %s90_s26, 0 }
  0x68   :  { %94 = shalt.err (%p198_p0)  }
  0x69   :  { %96 = vsyncmov [#allocation3 + $0x4] }
  0x6c   :  { %s97_s2 = vpop.sfrf %96 }
  0x6d   :  { %p199_p1 = scmp.ne.s32.totalorder %s97_s2, 0 }
  0x6f   :  { %101 = shalt.err (%p199_p1)  }
  0x70   :  { %103 = vsyncmov [#allocation3 + $0x5] }
  0x73   :  { %s104_s27 = vpop.sfrf %103 }
  0x74   :  { %p200_p2 = scmp.ne.s32.totalorder %s104_s27, 0 }
  0x76   :  { %108 = shalt.err (%p200_p2)  }
  0x77   :  { %110 = vsyncmov [#allocation3 + $0x6] }
  0x7a   :  { %s111_s28 = vpop.sfrf %110 }
  0x7b   :  { %p201_p3 = scmp.ne.s32.totalorder %s111_s28, 0 }
  0x7d   :  { %115 = shalt.err (%p201_p3)  }
  0x7e   :  { %117 = vsyncmov [#allocation3 + $0x7] }
  0x81   :  { %s118_s29 = vpop.sfrf %117 }
  0x82   :  { %p202_p4 = scmp.ne.s32.totalorder %s118_s29, 0 }
  0x84   :  { %122 = shalt.err (%p202_p4)  }
  0x85   :  { %124 = vsyncmov [#allocation3 + $0x8] }
  0x88   :  { %s125_s30 = vpop.sfrf %124 }
  0x89   :  { %p203_p5 = scmp.ne.s32.totalorder %s125_s30, 0 }
  0x8b   :  { %129 = shalt.err (%p203_p5)  }
  0x8c   :  { %131 = vsyncmov [#allocation3 + $0x9] }
  0x8f   :  { %s132_s3 = vpop.sfrf %131 }
  0x90   :  { %p204_p6 = scmp.ne.s32.totalorder %s132_s3, 0 }
  0x92   :  { %136 = shalt.err (%p204_p6)  }
  0x93   :  { %138 = vsyncmov [#allocation3 + $0xa] }
  0x96   :  { %s139_s4 = vpop.sfrf %138 }
  0x97   :  { %p205_p7 = scmp.ne.s32.totalorder %s139_s4, 0 }
  0x99   :  { %143 = shalt.err (%p205_p7)  }
  0x9a   :  { %145 = vsyncmov [#allocation3 + $0xb] }
  0x9d   :  { %s146_s5 = vpop.sfrf %145 }
  0x9e   :  { %p206_p8 = scmp.ne.s32.totalorder %s146_s5, 0 }
  0xa0   :  { %150 = shalt.err (%p206_p8)  }
  0xa1   :  { %152 = vsyncmov [#allocation3 + $0xc] }
  0xa4   :  { %s153_s6 = vpop.sfrf %152 }
  0xa5   :  { %p207_p9 = scmp.ne.s32.totalorder %s153_s6, 0 }
  0xa7   :  { %157 = shalt.err (%p207_p9)  }
  0xa8   :  { %159 = vsyncmov [#allocation3 + $0xd] }
  0xab   :  { %s160_s7 = vpop.sfrf %159 }
  0xac   :  { %p208_p10 = scmp.ne.s32.totalorder %s160_s7, 0 }
  0xae   :  { %164 = shalt.err (%p208_p10)  }
  0xaf   :  { %166 = vsyncmov [#allocation3 + $0xe] }
  0xb2   :  { %s167_s8 = vpop.sfrf %166 }
  0xb3   :  { %p209_p11 = scmp.ne.s32.totalorder %s167_s8, 0 }
  0xb5   :  { %171 = shalt.err (%p209_p11)  }
  0xb6   :  { %173 = vsyncmov [#allocation3 + $0xf] }
  0xb9   :  { %s174_s9 = vpop.sfrf %173 }
  0xba   :  { %p210_p12 = scmp.ne.s32.totalorder %s174_s9, 0 }
  0xbc   :  { %178 = shalt.err (%p210_p12)  }

</bundles_post_ra>
